<compile_context>
chip_gen: v7x
topology: tpu7x:2x2x1
jax: 0.10.0
libtpu: 0.0.40
codegen_flags: <defaults>
</compile_context>

<pallas_src>
import jax
import jax.numpy as jnp
from jax.experimental import pallas as pl
from jax.experimental.pallas import tpu as pltpu


# ---------------------------------------------------------------------------
# Kernel
# ---------------------------------------------------------------------------
def _se_kernel(x_ref, w1t_ref, b1_ref, w2t_ref, b2_ref, o_ref):
    # x block: (BN, Cg, HW); weights/biases are full (untiled, resident) arrays.
    # Squeeze: global average pool over the spatial (lane) axis, in f32.
    pooled = jnp.mean(x_ref[...].astype(jnp.float32), axis=-1)          # (BN, Cg)
    # 1x1 conv #1 (Cg -> Sg) + bias, Swish.  One tiny batched matmul.
    s1 = jnp.dot(pooled, w1t_ref[...],
                 preferred_element_type=jnp.float32) + b1_ref[...]      # (BN, Sg)
    s1 = s1 * jax.nn.sigmoid(s1)
    # 1x1 conv #2 (Sg -> Cg) + bias, Sigmoid.
    s2 = jnp.dot(s1, w2t_ref[...],
                 preferred_element_type=jnp.float32) + b2_ref[...]      # (BN, Cg)
    scale = jax.nn.sigmoid(s2)                                          # (BN, Cg)
    # Excite: re-read the block (don't keep it live across the FC chain) and
    # broadcast the per-(sample, channel) scale over the spatial lanes.
    o_ref[...] = (x_ref[...] * scale[:, :, None].astype(x_ref.dtype)).astype(o_ref.dtype)


# ---------------------------------------------------------------------------
# Tiling helpers
# ---------------------------------------------------------------------------
def _round_up(v, m):
    return -(-v // m) * m


def _vmem_plan():
    """(target block bytes, scoped-VMEM budget cap, physical VMEM) per TPU gen."""
    try:
        cap = int(getattr(pltpu.get_tpu_info(), "vmem_capacity_bytes", 0)) or (64 << 20)
    except Exception:  # pragma: no cover - conservative fallback off-TPU
        cap = 64 << 20
    if cap >= (96 << 20):                 # v5e / v6e: 128 MiB physical VMEM
        return 16 << 20, 100 << 20, cap
    return 8 << 20, 48 << 20, cap         # v7x: 64 MiB per TensorCore


def _pick_batch_tile(n, per_sample_vmem_bytes, target_bytes):
    """Largest batch tile whose x block stays <= target, preferring >= 4 grid
    steps (keeps both v7x TensorCores double-buffer pipelined), then >= 2."""
    fit = max(1, min(n, target_bytes // max(per_sample_vmem_bytes, 1)))
    for min_steps in (4, 2):
        cap = (n - 1) // (min_steps - 1)
        if cap >= 1:
            return min(fit, cap)
    return fit


def _pick_channel_group(n, c, pack):
    """Smallest g (dividing n) so g*c fills whole sublane packs; 1 if none."""
    if c % pack == 0:
        return 1
    for g in range(2, pack + 1):
        if (g * c) % pack == 0 and n % g == 0:
            return g
    return 1


# ---------------------------------------------------------------------------
# Wrapper
# ---------------------------------------------------------------------------
def squeeze_excitation(x, w1, b1, w2, b2):
    """SqueezeExcitation forward.

    x : (N, C, H, W)
    w1: (S, C)  -- Conv2d(C, S, 1) weight (squeezed);  b1: (S,)
    w2: (C, S)  -- Conv2d(S, C, 1) weight (squeezed);  b2: (C,)
    """
    N, C, H, W = x.shape
    S = w1.shape[0]
    HW = H * W
    itemsize = x.dtype.itemsize
    pack = max(8, 32 // itemsize)          # sublane packing for this dtype

    # Advisory cost (bandwidth-heavy custom call) for XLA's scheduler.
    flops = 2 * N * (2 * C * S) + 2 * N * C * HW
    transcendentals = 2 * N * (S + C)
    bytes_accessed = 2 * N * C * HW * itemsize + (w1.size + w2.size + b1.size + b2.size) * itemsize

    # Fold g samples into the channel (sublane) axis when C alone would leave
    # the sublane tiles half-empty; weights become block-diagonal so the kernel
    # math is unchanged and samples never mix.
    g = _pick_channel_group(N, C, pack)
    Ng, Cg, Sg = N // g, g * C, g * S
    x2 = x.reshape(Ng, Cg, HW)

    w1t = jnp.transpose(w1)                # (C, S) -> lane-major for the kernel
    w2t = jnp.transpose(w2)                # (S, C)
    b1v, b2v = b1, b2
    if g > 1:
        eye = jnp.eye(g, dtype=w1t.dtype)
        w1t = jnp.kron(eye, w1t)           # (Cg, Sg), block-diagonal
        w2t = jnp.kron(eye, w2t)           # (Sg, Cg)
        b1v = jnp.tile(b1, g)
        b2v = jnp.tile(b2, g)
    b1r = b1v.reshape(1, Sg)
    b2r = b2v.reshape(1, Cg)

    # Generation-aware tile sizing.  VMEM tiles pad (Cg, HW) to (pack, 128).
    target_bytes, budget_cap, phys_cap = _vmem_plan()
    per_sample_vmem = _round_up(Cg, pack) * _round_up(HW, 128) * itemsize
    bn = _pick_batch_tile(Ng, per_sample_vmem, target_bytes)
    block_vmem = bn * per_sample_vmem
    need = 4 * block_vmem + (4 << 20)      # in+out double-buffered + weights/slack
    vmem_budget = int(min(max(need, 16 << 20), budget_cap))
    if need > budget_cap:
        # TODO(synk): tile C/HW with partial-sum pooling for single samples bigger than VMEM.
        vmem_budget = int(min(need, phys_cap - (8 << 20)))

    grid = (pl.cdiv(Ng, bn),)              # ragged last block handled by Pallas

    out = pl.pallas_call(
        _se_kernel,
        out_shape=jax.ShapeDtypeStruct((Ng, Cg, HW), x.dtype),
        grid_spec=pltpu.PrefetchScalarGridSpec(
            num_scalar_prefetch=0,
            grid=grid,
            in_specs=[
                pl.BlockSpec((bn, Cg, HW), lambda i: (i, 0, 0)),   # x batch tile
                pl.BlockSpec((Cg, Sg), lambda i: (0, 0)),          # conv1 weight^T
                pl.BlockSpec((1, Sg), lambda i: (0, 0)),           # conv1 bias row
                pl.BlockSpec((Sg, Cg), lambda i: (0, 0)),          # conv2 weight^T
                pl.BlockSpec((1, Cg), lambda i: (0, 0)),           # conv2 bias row
            ],
            out_specs=pl.BlockSpec((bn, Cg, HW), lambda i: (i, 0, 0)),
        ),
        compiler_params=pltpu.CompilerParams(
            dimension_semantics=("parallel",),
            vmem_limit_bytes=vmem_budget,
        ),
        cost_estimate=pl.CostEstimate(
            flops=flops,
            transcendentals=transcendentals,
            bytes_accessed=bytes_accessed,
        ),
    )(x2, w1t, b1r, w2t, b2r)
    return out.reshape(N, C, H, W)


# ---------------------------------------------------------------------------
# Pure-JAX reference (mirrors the PyTorch forward)
# ---------------------------------------------------------------------------
def reference_se(x, w1, b1, w2, b2):
    pooled = jnp.mean(x, axis=(-2, -1))                   # (N, C)
    s1 = pooled @ w1.T + b1                               # (N, S)
    s1 = s1 * jax.nn.sigmoid(s1)
    s2 = s1 @ w2.T + b2                                   # (N, C)
    scale = jax.nn.sigmoid(s2)[:, :, None, None]          # (N, C, 1, 1)
    return scale * x


if __name__ == "__main__":
    def run_case(key, N, C, H, W, S):
        kx, k1, k2, k3, k4 = jax.random.split(key, 5)
        x = jax.random.normal(kx, (N, C, H, W), dtype=jnp.float32)
        # Conv2d(C, S, 1) weight (S, C, 1, 1) -> (S, C); bias (S,)
        w1 = 0.1 * jax.random.normal(k1, (S, C), dtype=jnp.float32)
        b1 = 0.1 * jax.random.normal(k2, (S,), dtype=jnp.float32)
        # Conv2d(S, C, 1) weight (C, S, 1, 1) -> (C, S); bias (C,)
        w2 = 0.1 * jax.random.normal(k3, (C, S), dtype=jnp.float32)
        b2 = 0.1 * jax.random.normal(k4, (C,), dtype=jnp.float32)

        out = jax.block_until_ready(squeeze_excitation(x, w1, b1, w2, b2))
        ref = reference_se(x, w1, b1, w2, b2)
        assert out.shape == (N, C, H, W)
        assert jnp.allclose(out, ref, atol=1e-5, rtol=1e-5), \
            float(jnp.max(jnp.abs(out - ref)))

    key = jax.random.PRNGKey(0)
    k0, k1, k2 = jax.random.split(key, 3)
    # Spec-sized case: C=4 triggers the sublane channel-group fold (g=2).
    run_case(k0, N=2, C=4, H=16, W=16, S=2)
    # Batched-tile path: bn=2, grid=(4,) -> both v7x TCs get pipelined steps.
    run_case(k1, N=8, C=8, H=16, W=16, S=4)
    # Awkward N exercising the cdiv grid with a ragged final block (bn=2, grid=4).
    run_case(k2, N=7, C=8, H=16, W=16, S=4)

    print("KERNEL_OK")
</pallas_src>

<mosaic_0001>
module attributes {stable_mosaic.version = 11 : i64} {
  func.func @_se_kernel(%arg0: i32, %arg1: memref<1x8x256xf32, #tpu.memory_space<vmem>>, %arg2: memref<8x4xf32, #tpu.memory_space<vmem>>, %arg3: memref<1x4xf32, #tpu.memory_space<vmem>>, %arg4: memref<4x8xf32, #tpu.memory_space<vmem>>, %arg5: memref<1x8xf32, #tpu.memory_space<vmem>>, %arg6: memref<1x8x256xf32, #tpu.memory_space<vmem>>) attributes {dimension_semantics = [#tpu.dimension_semantics<parallel>], iteration_bounds = array<i64: 1>, scalar_prefetch = 0 : i64, scratch_operands = 0 : i64, tpu.core_type = #tpu.core_type<tc>, window_params = [{transform_indices = @transform_0, window_bounds = array<i64: 1, 8, 256>}, {pipeline_mode = #tpu.pipeline_mode<synchronous>, transform_indices = @transform_1, window_bounds = array<i64: 8, 4>}, {pipeline_mode = #tpu.pipeline_mode<synchronous>, transform_indices = @transform_2, window_bounds = array<i64: 1, 4>}, {pipeline_mode = #tpu.pipeline_mode<synchronous>, transform_indices = @transform_3, window_bounds = array<i64: 4, 8>}, {pipeline_mode = #tpu.pipeline_mode<synchronous>, transform_indices = @transform_4, window_bounds = array<i64: 1, 8>}, {transform_indices = @transform_5, window_bounds = array<i64: 1, 8, 256>}]} {
    %c0 = arith.constant 0 : index
    %c0_0 = arith.constant 0 : index
    %c0_1 = arith.constant 0 : index
    %0 = vector.load %arg1[%c0, %c0_0, %c0_1] : memref<1x8x256xf32, #tpu.memory_space<vmem>>, vector<1x8x256xf32>
    %cst = arith.constant dense<0.000000e+00> : vector<1x8xf32>
    %1 = vector.multi_reduction <add>, %0, %cst [2] : vector<1x8x256xf32> to vector<1x8xf32>
    %cst_2 = arith.constant 2.560000e+02 : f32
    %2 = vector.broadcast %cst_2 : f32 to vector<1x8xf32>
    %3 = arith.divf %1, %2 : vector<1x8xf32>
    %c0_3 = arith.constant 0 : index
    %c0_4 = arith.constant 0 : index
    %4 = vector.load %arg2[%c0_3, %c0_4] : memref<8x4xf32, #tpu.memory_space<vmem>>, vector<8x4xf32>
    %cst_5 = arith.constant dense<0.000000e+00> : vector<1x4xf32>
    %5 = tpu.matmul %3, %4, %cst_5 {dimension_numbers = #tpu.dot_dimension_numbers<[1], [0], [0], [1], [0, 0, 1, 1], [], []>} : vector<1x8xf32>, vector<8x4xf32>, vector<1x4xf32> -> vector<1x4xf32>
    %c0_6 = arith.constant 0 : index
    %c0_7 = arith.constant 0 : index
    %6 = vector.load %arg3[%c0_6, %c0_7] : memref<1x4xf32, #tpu.memory_space<vmem>>, vector<1x4xf32>
    %7 = arith.addf %5, %6 : vector<1x4xf32>
    %8 = arith.negf %7 : vector<1x4xf32>
    %9 = math.exp %8 : vector<1x4xf32>
    %cst_8 = arith.constant 1.000000e+00 : f32
    %10 = vector.broadcast %cst_8 : f32 to vector<1x4xf32>
    %11 = arith.addf %10, %9 : vector<1x4xf32>
    %12 = arith.divf %10, %11 : vector<1x4xf32>
    %13 = arith.mulf %7, %12 : vector<1x4xf32>
    %c0_9 = arith.constant 0 : index
    %c0_10 = arith.constant 0 : index
    %14 = vector.load %arg4[%c0_9, %c0_10] : memref<4x8xf32, #tpu.memory_space<vmem>>, vector<4x8xf32>
    %cst_11 = arith.constant dense<0.000000e+00> : vector<1x8xf32>
    %15 = tpu.matmul %13, %14, %cst_11 {dimension_numbers = #tpu.dot_dimension_numbers<[1], [0], [0], [1], [0, 0, 1, 1], [], []>} : vector<1x4xf32>, vector<4x8xf32>, vector<1x8xf32> -> vector<1x8xf32>
    %c0_12 = arith.constant 0 : index
    %c0_13 = arith.constant 0 : index
    %16 = vector.load %arg5[%c0_12, %c0_13] : memref<1x8xf32, #tpu.memory_space<vmem>>, vector<1x8xf32>
    %17 = arith.addf %15, %16 : vector<1x8xf32>
    %18 = arith.negf %17 : vector<1x8xf32>
    %19 = math.exp %18 : vector<1x8xf32>
    %cst_14 = arith.constant 1.000000e+00 : f32
    %20 = vector.broadcast %cst_14 : f32 to vector<1x8xf32>
    %21 = arith.addf %20, %19 : vector<1x8xf32>
    %22 = arith.divf %20, %21 : vector<1x8xf32>
    %c0_15 = arith.constant 0 : index
    %c0_16 = arith.constant 0 : index
    %c0_17 = arith.constant 0 : index
    %23 = vector.load %arg1[%c0_15, %c0_16, %c0_17] : memref<1x8x256xf32, #tpu.memory_space<vmem>>, vector<1x8x256xf32>
    %24 = vector.shape_cast %22 : vector<1x8xf32> to vector<1x8x1xf32>
    %25 = vector.broadcast %24 : vector<1x8x1xf32> to vector<1x8x256xf32>
    %26 = arith.mulf %23, %25 : vector<1x8x256xf32>
    %c0_18 = arith.constant 0 : index
    %c0_19 = arith.constant 0 : index
    %c0_20 = arith.constant 0 : index
    %27 = vector.load %arg6[%c0_18, %c0_19, %c0_20] : memref<1x8x256xf32, #tpu.memory_space<vmem>>, vector<1x8x256xf32>
    tpu.vector_store %arg6[%c0_18, %c0_19, %c0_20], %26 {strides = array<i32>} : memref<1x8x256xf32, #tpu.memory_space<vmem>>, vector<1x8x256xf32>,
    return
  }
  func.func @transform_0(%arg0: i32) -> (i32, i32, i32) {
    %c0_i32 = arith.constant 0 : i32
    %c0_i32_0 = arith.constant 0 : i32
    %c0_i32_1 = arith.constant 0 : i32
    return %arg0, %c0_i32, %c0_i32_0 : i32, i32, i32
  }
  func.func @transform_1(%arg0: i32) -> (i32, i32) {
    %c0_i32 = arith.constant 0 : i32
    %c0_i32_0 = arith.constant 0 : i32
    %c0_i32_1 = arith.constant 0 : i32
    return %c0_i32, %c0_i32_0 : i32, i32
  }
  func.func @transform_2(%arg0: i32) -> (i32, i32) {
    %c0_i32 = arith.constant 0 : i32
    %c0_i32_0 = arith.constant 0 : i32
    %c0_i32_1 = arith.constant 0 : i32
    return %c0_i32, %c0_i32_0 : i32, i32
  }
  func.func @transform_3(%arg0: i32) -> (i32, i32) {
    %c0_i32 = arith.constant 0 : i32
    %c0_i32_0 = arith.constant 0 : i32
    %c0_i32_1 = arith.constant 0 : i32
    return %c0_i32, %c0_i32_0 : i32, i32
  }
  func.func @transform_4(%arg0: i32) -> (i32, i32) {
    %c0_i32 = arith.constant 0 : i32
    %c0_i32_0 = arith.constant 0 : i32
    %c0_i32_1 = arith.constant 0 : i32
    return %c0_i32, %c0_i32_0 : i32, i32
  }
  func.func @transform_5(%arg0: i32) -> (i32, i32, i32) {
    %c0_i32 = arith.constant 0 : i32
    %c0_i32_0 = arith.constant 0 : i32
    %c0_i32_1 = arith.constant 0 : i32
    return %arg0, %c0_i32, %c0_i32_0 : i32, i32, i32
  }
}

</mosaic_0001>

<bundles_post_ra>
// kernel: tpu_custom_call.1
= control target key start
LH: loop header
LB: loop body
LE: loop exit
PB: predicated region body
PF: predicated region fallthrough
CT: control target
= control target key end

     0   :  { %10 = vsyncpa [#allocation3], 0  ;;  %s390_s0 = inlined_call_operand.hbm [shape: f32[1,8,256], index: 0, kind: input, shape index: {}]   ;;  %s391_s1 = inlined_call_operand.vmem [shape: f32[8,4], index: 1, kind: input, shape index: {}]   ;;  %s392_s2 = inlined_call_operand.vmem [shape: f32[1,4], index: 2, kind: input, shape index: {}]   ;;  %s393_s3 = inlined_call_operand.vmem [shape: f32[4,8], index: 3, kind: input, shape index: {}]   ;;  %s394_s4 = inlined_call_operand.vmem [shape: f32[1,8], index: 4, kind: input, shape index: {}]   ;;  %s395_s5 = inlined_call_operand.hbm [shape: f32[1,8,256], index: 5, kind: output, shape index: {}]  }
   0x1   :  { %11 = vsyncpa [#allocation4], 0  ;;  %s320_s18 = smov [#allocation2]   ;;  %s272_s22 = scalar_lea.hbm %s390_s0, 256 }
   0x2   :  { %s18_s19 = sshll.u32 %s320_s18, 4  ;;  %p273_p0 = scmp.ne.s32.totalorder %s390_s0, %s272_s22  ;;  %s19_s19 = int_to_ptr.vmem [resolvable:$true] %s18_s19 }
   0x3   :  { %p276_p1 = scmp.lt.u32.totalorder %s272_s22, %s390_s0 }
   0x5   :  { %p278_p2 = pnand %p276_p1, %p273_p0 }
   0x7   :  { %281 = shalt.err (!%p278_p2)
}
   0x8   :  { %s282_s27 = scalar_lea.vmem %s19_s19, 256  ;;  %p287_p4 = scmp.lt.s32.totalorder %s19_s19, %s19_s19 }
   0x9   :  { %p283_p3 = scmp.ne.s32.totalorder %s19_s19, %s282_s27  ;;  %p288_p5 = scmp.lt.s32.totalorder %s282_s27, %s282_s27 }
   0xb   :  { %p289_p6 = por %p288_p5, %p287_p4 }
   0xd   :  { %p290_p7 = pnand %p289_p6, %p283_p3 }
   0xf   :  { %293 = shalt.err (!%p290_p7)
}
  0x10   :  { %21 = dma.hbm_to_vmem [thread:$0]  %s390_s0, 256, %s19_s19, [#allocation3]  }
  0x11   :  { %316 = dma.done.wait [#allocation3], 256  }
  0x12   :  { %317 = vsyncadd [#allocation3], 4294967040  ;;  %v33_v0 = vld [vmem:[#allocation2] sm:$0xff]  ;;  %v34_v1 = vld [vmem:[#allocation2 + $0x8] sm:$0xff]  ;;  %v321_v3 = vmov 0.0   ;;  %vm322_vm0 = vmmov 0   ;;  %v43_v5 = vlaneseq }
  0x13   :  { %v35_v2 = vadd.f32 %v34_v1, %v33_v0  ;;  %250 = vmatprep.subr.mxu0 %v321_v3  ;;  %v40_v4 = vld [vmem:[%s391_s1] sm:$0xff]  ;;  %255 = vmatprep.subr.mxu1 %v321_v3  ;;  %vm49_vm1 = vcmask 64512   ;;  %vm135_vm2 = vcmask 1043456   ;;  %vm131_vm3 = vcmask 31744  }
  0x14   :  { %251 = vmatpush3.msra.mxu0 %v40_v4  ;;  %252 = vmatprep.mubr.msk.f32.mxu0 %vm322_vm0, %v321_v3  ;;  %v44_v6 = vand.u32 127, %v43_v5  ;;  %v46_v7 = vshrl.u32 %v43_v5, 7  ;;  %v129_v12 = vld [vmem:[%s393_s3] sm:$0xf] }
  0x15   :  { %36 = vadd.xlane.f32.xlu0 %v35_v2  ;;  %257 = vmatprep.mubr.msk.f32.mxu1 %vm322_vm0, %v321_v3  ;;  %v41_v13 = vld [vmem:[%s392_s2] sm:$0x1]  ;;  %s323_s2 = smov [#allocation5]  }
  0x16   :  { %v47_v8 = vsub.s32 %v44_v6, %v46_v7  ;;  %256 = vmatpush3.msk.msra.mxu1 %vm135_vm2, %v129_v12  ;;  %v130_v22 = vld [vmem:[%s394_s4] sm:$0x1]  ;;  %v217_v29 = vsub.s32 0, %v46_v7  ;;  %s232_s10 = sshll.u32 %s323_s2, 4  ;;  %s233_s10 = int_to_ptr.vmem [resolvable:$true] %s232_s10 }
  0x17   :  { %s294_s4 = scalar_lea.vmem %s233_s10, 256  ;;  %p299_p9 = scmp.lt.s32.totalorder %s233_s10, %s233_s10 }
  0x18   :  { %p295_p8 = scmp.ne.s32.totalorder %s233_s10, %s294_s4  ;;  %p300_p10 = scmp.lt.s32.totalorder %s294_s4, %s294_s4 }
  0x1a   :  { %p301_p11 = por %p300_p10, %p299_p9 }
  0x1c   :  { %p302_p12 = pnand %p301_p11, %p295_p8 }
  0xa2   :  { %v37_v9 = vpop.xlane.xlu0 %36 }
  0xa3   :  { %v39_v10 = vmul.f32 0.00390625, %v37_v9 }
  0xa5   :  { %v48_v11 = vrot.slane %v39_v10, %v47_v8 }
  0xa7   :  { %253 = vmatmul.mubr.msk.f32.vlgmr.msra.gmra.mrb[0].mxu0 %vm49_vm1, %v48_v11 }
 0x17a   :  { %v118_v14 = vpop.f32.mrb[0].mxu0 }
 0x17b   :  { %v119_v15 = vadd.f32 %v118_v14, %v41_v13  ;;  %v254_v16 = vpop.f32.mrb[1].mxu0 }
 0x17d   :  { %v242_v17 = vmul.f32 -1.442695, %v119_v15 }
 0x17f   :  { %264 = vpow2.f32 %v242_v17 }
 0x189   :  { %v265_v18 = vpop.eup %264 }
 0x18a   :  { %v125_v19 = vadd.f32 1.0, %v265_v18 }
 0x18c   :  { %266 = vrcp.f32 %v125_v19 }
 0x196   :  { %v267_v20 = vpop.eup %266 }
 0x197   :  { %v128_v21 = vmul.f32 %v267_v20, %v119_v15 }
 0x199   :  { %258 = vmatmul.mubr.msk.f32.vlgmr.msra.gmra.mrb[0].mxu1 %vm131_vm3, %v128_v21 }
 0x26c   :  { %v205_v23 = vpop.f32.mrb[0].mxu1 }
 0x26d   :  { %v206_v24 = vadd.f32 %v205_v23, %v130_v22  ;;  %v259_v25 = vpop.f32.mrb[1].mxu1 }
 0x26f   :  { %v245_v26 = vmul.f32 -1.442695, %v206_v24 }
 0x271   :  { %268 = vpow2.f32 %v245_v26 }
 0x27b   :  { %v269_v27 = vpop.eup %268 }
 0x27c   :  { %v212_v28 = vadd.f32 1.0, %v269_v27 }
 0x27e   :  { %270 = vrcp.f32 %v212_v28 }
 0x288   :  { %v271_v30 = vpop.eup %270 }
 0x289   :  { %v218_v31 = vrot.slane %v271_v30, %v217_v29 }
 0x28b   :  { %220 = vbcast.lane.b32.xlu0 %v218_v31, 256 }
 0x2fd   :  { %v221_v32 = vpop.permute.xlu0 %220 }
 0x2fe   :  { %v222_v33 = vmul.f32 %v221_v32, %v33_v0  ;;  %v223_v34 = vmul.f32 %v221_v32, %v34_v1 }
 0x300   :  { %224 = vst [vmem:[#allocation5] sm:$0xff] %v222_v33  ;;  %225 = vst [vmem:[#allocation5 + $0x8] sm:$0xff] %v223_v34 }
 0x301   :  { %305 = shalt.err (!%p302_p12)
}
 0x302   :  { %s306_s13 = scalar_lea.hbm %s395_s5, 256 }
 0x303   :  { %p307_p13 = scmp.ne.s32.totalorder %s395_s5, %s306_s13  ;;  %p310_p0 = scmp.lt.u32.totalorder %s306_s13, %s395_s5 }
 0x305   :  { %p312_p1 = pnand %p310_p0, %p307_p13 }
 0x307   :  { %315 = shalt.err (!%p312_p1)
}
 0x308   :  { %235 = dma.vmem_to_hbm [thread:$0]  %s233_s10, 256, %s395_s5, [#allocation4]  }
 0x309   :  { %318 = dma.done.wait [#allocation4], 256  }
 0x30a   :  { %319 = vsyncadd [#allocation4], 4294967040 }
 0x30b   :  { %239 = vsyncpa [#allocation3], 1 }
 0x30c   :  { %240 = vsyncpa [#allocation4], 1 }

</bundles_post_ra>
